<compile_context>
chip_gen: v7x
topology: tpu7x:2x2x1
jax: 0.10.0
libtpu: 0.0.40
codegen_flags: <defaults>
</compile_context>

<pallas_src>
import jax
import jax.numpy as jnp
from jax.experimental import pallas as pl
from jax.experimental.pallas import tpu as pltpu

# ----------------------------- model config ---------------------------------
INPUT_DIM = 16
H1, H2 = 128, 64
OUTPUT_CONFIG = [(4, "tanh"), (3, "softmax"), (5, "relu"),
                 (2, "sigmoid"), (2, "none")]
OUT_DIM = sum(s for s, _ in OUTPUT_CONFIG)
TB_MAX = 4096        # batch tile upper bound; per-tile VMEM stays a few MiB


def _mixed_activations_fused(o):
    """Mixed per-segment output activations, fused into one exp + one recip pass.

    Masks are built at (1, width) (single vreg) and broadcast by jnp.where.
    tanh/sigmoid/softmax all feed off a single masked exp:
      tanh lanes:    arg = -2*o   -> tanh    = 2/(1+e) - 1
      sigmoid lanes: arg = -o     -> sigmoid = 1/(1+e)
      softmax lanes: arg = o - mx -> softmax = e / sum_masked(e)
      other lanes:   arg = 0 (exp(0)=1, discarded)
    Overflow on tanh/sigmoid lanes (e -> +inf) yields the correct limits (-1 / 0);
    the softmax sum only sees masked lanes, so stray values cannot poison it.
    """
    width = o.shape[-1]
    lane = jax.lax.broadcasted_iota(jnp.int32, (1, width), 1)

    segs = []
    off = 0
    for size, act in OUTPUT_CONFIG:
        m = (lane >= off) & (lane < off + size)
        segs.append((act, m))
        off += size

    # --- build the single exp argument --------------------------------------
    arg = jnp.zeros_like(o)
    for act, m in segs:
        if act == "tanh":
            arg = jnp.where(m, -2.0 * o, arg)
        elif act == "sigmoid":
            arg = jnp.where(m, -o, arg)
        elif act == "softmax":
            mx = jnp.max(jnp.where(m, o, -jnp.inf), axis=1, keepdims=True)
            arg = jnp.where(m, o - mx, arg)
        elif act in ("relu", "leaky_relu", "none", None):
            pass
        else:
            raise ValueError(f"Unsupported activation: {act}")

    e = jnp.exp(arg)          # single full-width EUP pass
    r = 1.0 / (1.0 + e)       # single full-width reciprocal (shared tanh/sigmoid)

    # --- assemble the output -------------------------------------------------
    out = o
    for act, m in segs:
        if act == "tanh":
            out = jnp.where(m, 2.0 * r - 1.0, out)
        elif act == "sigmoid":
            out = jnp.where(m, r, out)
        elif act == "relu":
            out = jnp.where(m, jnp.maximum(o, 0.0), out)
        elif act == "leaky_relu":
            out = jnp.where(m, jnp.where(o >= 0.0, o, 0.01 * o), out)
        elif act == "softmax":
            s = jnp.sum(jnp.where(m, e, 0.0), axis=1, keepdims=True)
            out = jnp.where(m, e * (1.0 / s), out)
        elif act == "none" or act is None:
            pass
        else:
            raise ValueError(f"Unsupported activation: {act}")
    return out


def mlp_kernel(x_ref, w1_ref, b1_ref, w2_ref, b2_ref, w3_ref, b3_ref, o_ref):
    x = x_ref[...]

    # body layer 0: Linear(16 -> 128) + ReLU
    h = jnp.dot(x, w1_ref[...], preferred_element_type=jnp.float32) + b1_ref[...]
    h = jnp.maximum(h, 0.0)

    # body layer 1: Linear(128 -> 64) + ReLU
    h = jnp.dot(h, w2_ref[...], preferred_element_type=jnp.float32) + b2_ref[...]
    h = jnp.maximum(h, 0.0)

    # output layer: Linear(64 -> 16), then mixed activations (fused epilogue).
    o = jnp.dot(h, w3_ref[...], preferred_element_type=jnp.float32) + b3_ref[...]
    o_ref[...] = _mixed_activations_fused(o).astype(o_ref.dtype)


def _round_up(v, m):
    return (v + m - 1) // m * m


def _choose_tile(batch):
    """Pick a batch tile: multiple of 8, <= TB_MAX, and (when possible) an even
    number of grid steps >= 2 so a megacore (v7x) can split them evenly."""
    n_steps = pl.cdiv(batch, TB_MAX)
    if n_steps < 2:
        n_steps = 2
    elif n_steps % 2:
        n_steps += 1
    tb = max(8, _round_up(pl.cdiv(batch, n_steps), 8))
    return min(TB_MAX, tb)


@jax.jit
def mlp_forward(x, params):
    w1, b1, w2, b2, w3, b3 = params
    batch = x.shape[0]

    tb = _choose_tile(batch)
    grid = (pl.cdiv(batch, tb),)   # ragged last block handled by Pallas

    flops = 2 * batch * (INPUT_DIM * H1 + H1 * H2 + H2 * OUT_DIM)
    transcendentals = 2 * batch * OUT_DIM          # one exp + one recip per lane
    bytes_accessed = 4 * (batch * (INPUT_DIM + OUT_DIM)
                          + INPUT_DIM * H1 + H1
                          + H1 * H2 + H2
                          + H2 * OUT_DIM + OUT_DIM)
    cost = pl.CostEstimate(flops=flops,
                           transcendentals=transcendentals,
                           bytes_accessed=bytes_accessed)

    out = pl.pallas_call(
        mlp_kernel,
        out_shape=jax.ShapeDtypeStruct((batch, OUT_DIM), jnp.float32),
        grid=grid,
        in_specs=[
            pl.BlockSpec((tb, INPUT_DIM), lambda i: (i, 0)),   # activations: tiled
            pl.BlockSpec((INPUT_DIM, H1), lambda i: (0, 0)),   # weights/biases:
            pl.BlockSpec((1, H1),         lambda i: (0, 0)),   #   block-invariant,
            pl.BlockSpec((H1, H2),        lambda i: (0, 0)),   #   VMEM-resident
            pl.BlockSpec((1, H2),         lambda i: (0, 0)),
            pl.BlockSpec((H2, OUT_DIM),   lambda i: (0, 0)),
            pl.BlockSpec((1, OUT_DIM),    lambda i: (0, 0)),
        ],
        out_specs=pl.BlockSpec((tb, OUT_DIM), lambda i: (i, 0)),
        compiler_params=pltpu.CompilerParams(
            dimension_semantics=("parallel",),
            vmem_limit_bytes=32 * 1024 * 1024),
        cost_estimate=cost,
    )(x, w1, b1, w2, b2, w3, b3)

    return out


def init_params(key):
    """Deterministic parameter init (shapes match nn.Linear in the module,
    stored transposed: (in, out))."""
    dims = [INPUT_DIM, H1, H2, OUT_DIM]
    params = []
    for i in range(len(dims) - 1):
        d_in, d_out = dims[i], dims[i + 1]
        key, kw, kb = jax.random.split(key, 3)
        bound = 1.0 / (d_in ** 0.5)
        w = jax.random.uniform(kw, (d_in, d_out), jnp.float32, -bound, bound)
        b = jax.random.uniform(kb, (1, d_out), jnp.float32, -bound, bound)
        params += [w, b]
    return tuple(params)


def mlp_reference(x, params):
    """Pure-JAX reference (slice/activate/concat, native tanh/sigmoid/softmax)."""
    w1, b1, w2, b2, w3, b3 = params
    h = jnp.maximum(x @ w1 + b1, 0.0)
    h = jnp.maximum(h @ w2 + b2, 0.0)
    o = h @ w3 + b3
    parts, off = [], 0
    for size, act in OUTPUT_CONFIG:
        seg = o[:, off:off + size]
        if act == "tanh":
            seg = jnp.tanh(seg)
        elif act == "sigmoid":
            seg = jax.nn.sigmoid(seg)
        elif act == "relu":
            seg = jnp.maximum(seg, 0.0)
        elif act == "leaky_relu":
            seg = jnp.where(seg >= 0.0, seg, 0.01 * seg)
        elif act == "softmax":
            seg = jax.nn.softmax(seg, axis=1)
        parts.append(seg)
        off += size
    return jnp.concatenate(parts, axis=1)


if __name__ == "__main__":
    key = jax.random.PRNGKey(0)
    kx, kp = jax.random.split(key)
    params = init_params(kp)

    # Small shape (single grid step).
    batch = 8
    x = jax.random.normal(kx, (batch, INPUT_DIM), jnp.float32)
    out = mlp_forward(x, params)
    jax.block_until_ready(out)
    ref = mlp_reference(x, params)
    assert out.shape == (batch, OUT_DIM), out.shape
    assert jnp.allclose(out, ref, atol=2e-3, rtol=2e-3), \
        float(jnp.max(jnp.abs(out - ref)))

    # Exercise the multi-step grid + ragged last block (no explicit padding).
    batch2 = 5000
    x2 = jax.random.normal(kx, (batch2, INPUT_DIM), jnp.float32)
    out2 = mlp_forward(x2, params)
    jax.block_until_ready(out2)
    ref2 = mlp_reference(x2, params)
    assert out2.shape == (batch2, OUT_DIM), out2.shape
    assert jnp.allclose(out2, ref2, atol=2e-3, rtol=2e-3), \
        float(jnp.max(jnp.abs(out2 - ref2)))

    print("KERNEL_OK")
</pallas_src>

<mosaic_0001>
module attributes {stable_mosaic.version = 11 : i64} {
  func.func @mlp_kernel(%arg0: i32, %arg1: memref<8x16xf32, #tpu.memory_space<vmem>>, %arg2: memref<16x128xf32, #tpu.memory_space<vmem>>, %arg3: memref<1x128xf32, #tpu.memory_space<vmem>>, %arg4: memref<128x64xf32, #tpu.memory_space<vmem>>, %arg5: memref<1x64xf32, #tpu.memory_space<vmem>>, %arg6: memref<64x16xf32, #tpu.memory_space<vmem>>, %arg7: memref<1x16xf32, #tpu.memory_space<vmem>>, %arg8: memref<8x16xf32, #tpu.memory_space<vmem>>) attributes {dimension_semantics = [#tpu.dimension_semantics<parallel>], iteration_bounds = array<i64: 1>, scalar_prefetch = 0 : i64, scratch_operands = 0 : i64, tpu.core_type = #tpu.core_type<tc>, window_params = [{transform_indices = @transform_0, window_bounds = array<i64: 8, 16>}, {pipeline_mode = #tpu.pipeline_mode<synchronous>, transform_indices = @transform_1, window_bounds = array<i64: 16, 128>}, {pipeline_mode = #tpu.pipeline_mode<synchronous>, transform_indices = @transform_2, window_bounds = array<i64: 1, 128>}, {pipeline_mode = #tpu.pipeline_mode<synchronous>, transform_indices = @transform_3, window_bounds = array<i64: 128, 64>}, {pipeline_mode = #tpu.pipeline_mode<synchronous>, transform_indices = @transform_4, window_bounds = array<i64: 1, 64>}, {pipeline_mode = #tpu.pipeline_mode<synchronous>, transform_indices = @transform_5, window_bounds = array<i64: 64, 16>}, {pipeline_mode = #tpu.pipeline_mode<synchronous>, transform_indices = @transform_6, window_bounds = array<i64: 1, 16>}, {transform_indices = @transform_7, window_bounds = array<i64: 8, 16>}]} {
    %c0 = arith.constant 0 : index
    %c0_0 = arith.constant 0 : index
    %0 = vector.load %arg1[%c0, %c0_0] : memref<8x16xf32, #tpu.memory_space<vmem>>, vector<8x16xf32>
    %c0_1 = arith.constant 0 : index
    %c0_2 = arith.constant 0 : index
    %1 = vector.load %arg2[%c0_1, %c0_2] : memref<16x128xf32, #tpu.memory_space<vmem>>, vector<16x128xf32>
    %cst = arith.constant dense<0.000000e+00> : vector<8x128xf32>
    %2 = tpu.matmul %0, %1, %cst {dimension_numbers = #tpu.dot_dimension_numbers<[1], [0], [0], [1], [0, 0, 1, 1], [], []>} : vector<8x16xf32>, vector<16x128xf32>, vector<8x128xf32> -> vector<8x128xf32>
    %c0_3 = arith.constant 0 : index
    %c0_4 = arith.constant 0 : index
    %3 = vector.load %arg3[%c0_3, %c0_4] : memref<1x128xf32, #tpu.memory_space<vmem>>, vector<1x128xf32>
    %4 = vector.broadcast %3 : vector<1x128xf32> to vector<8x128xf32>
    %5 = arith.addf %2, %4 : vector<8x128xf32>
    %cst_5 = arith.constant 0.000000e+00 : f32
    %6 = vector.broadcast %cst_5 : f32 to vector<8x128xf32>
    %7 = arith.maximumf %5, %6 : vector<8x128xf32>
    %c0_6 = arith.constant 0 : index
    %c0_7 = arith.constant 0 : index
    %8 = vector.load %arg4[%c0_6, %c0_7] : memref<128x64xf32, #tpu.memory_space<vmem>>, vector<128x64xf32>
    %cst_8 = arith.constant dense<0.000000e+00> : vector<8x64xf32>
    %9 = tpu.matmul %7, %8, %cst_8 {dimension_numbers = #tpu.dot_dimension_numbers<[1], [0], [0], [1], [0, 0, 1, 1], [], []>} : vector<8x128xf32>, vector<128x64xf32>, vector<8x64xf32> -> vector<8x64xf32>
    %c0_9 = arith.constant 0 : index
    %c0_10 = arith.constant 0 : index
    %10 = vector.load %arg5[%c0_9, %c0_10] : memref<1x64xf32, #tpu.memory_space<vmem>>, vector<1x64xf32>
    %11 = vector.broadcast %10 : vector<1x64xf32> to vector<8x64xf32>
    %12 = arith.addf %9, %11 : vector<8x64xf32>
    %cst_11 = arith.constant 0.000000e+00 : f32
    %13 = vector.broadcast %cst_11 : f32 to vector<8x64xf32>
    %14 = arith.maximumf %12, %13 : vector<8x64xf32>
    %c0_12 = arith.constant 0 : index
    %c0_13 = arith.constant 0 : index
    %15 = vector.load %arg6[%c0_12, %c0_13] : memref<64x16xf32, #tpu.memory_space<vmem>>, vector<64x16xf32>
    %cst_14 = arith.constant dense<0.000000e+00> : vector<8x16xf32>
    %16 = tpu.matmul %14, %15, %cst_14 {dimension_numbers = #tpu.dot_dimension_numbers<[1], [0], [0], [1], [0, 0, 1, 1], [], []>} : vector<8x64xf32>, vector<64x16xf32>, vector<8x16xf32> -> vector<8x16xf32>
    %c0_15 = arith.constant 0 : index
    %c0_16 = arith.constant 0 : index
    %17 = vector.load %arg7[%c0_15, %c0_16] : memref<1x16xf32, #tpu.memory_space<vmem>>, vector<1x16xf32>
    %18 = vector.broadcast %17 : vector<1x16xf32> to vector<8x16xf32>
    %19 = arith.addf %16, %18 : vector<8x16xf32>
    %20 = tpu.iota {dimensions = array<i32: 1>} : vector<1x16xi32>
    %c0_i32 = arith.constant 0 : i32
    %21 = vector.broadcast %c0_i32 : i32 to vector<1x16xi32>
    %22 = arith.cmpi sge, %20, %21 : vector<1x16xi32>
    %c4_i32 = arith.constant 4 : i32
    %23 = vector.broadcast %c4_i32 : i32 to vector<1x16xi32>
    %24 = arith.cmpi slt, %20, %23 : vector<1x16xi32>
    %25 = arith.andi %22, %24 : vector<1x16xi1>
    %c4_i32_17 = arith.constant 4 : i32
    %26 = vector.broadcast %c4_i32_17 : i32 to vector<1x16xi32>
    %27 = arith.cmpi sge, %20, %26 : vector<1x16xi32>
    %c7_i32 = arith.constant 7 : i32
    %28 = vector.broadcast %c7_i32 : i32 to vector<1x16xi32>
    %29 = arith.cmpi slt, %20, %28 : vector<1x16xi32>
    %30 = arith.andi %27, %29 : vector<1x16xi1>
    %c7_i32_18 = arith.constant 7 : i32
    %31 = vector.broadcast %c7_i32_18 : i32 to vector<1x16xi32>
    %32 = arith.cmpi sge, %20, %31 : vector<1x16xi32>
    %c12_i32 = arith.constant 12 : i32
    %33 = vector.broadcast %c12_i32 : i32 to vector<1x16xi32>
    %34 = arith.cmpi slt, %20, %33 : vector<1x16xi32>
    %35 = arith.andi %32, %34 : vector<1x16xi1>
    %c12_i32_19 = arith.constant 12 : i32
    %36 = vector.broadcast %c12_i32_19 : i32 to vector<1x16xi32>
    %37 = arith.cmpi sge, %20, %36 : vector<1x16xi32>
    %c14_i32 = arith.constant 14 : i32
    %38 = vector.broadcast %c14_i32 : i32 to vector<1x16xi32>
    %39 = arith.cmpi slt, %20, %38 : vector<1x16xi32>
    %40 = arith.andi %37, %39 : vector<1x16xi1>
    %cst_20 = arith.constant 0.000000e+00 : f32
    %41 = vector.broadcast %cst_20 : f32 to vector<8x16xf32>
    %cst_21 = arith.constant -2.000000e+00 : f32
    %42 = vector.broadcast %cst_21 : f32 to vector<8x16xf32>
    %43 = arith.mulf %42, %19 : vector<8x16xf32>
    %44 = vector.shape_cast %25 : vector<1x16xi1> to vector<1x16xi1>
    %45 = vector.broadcast %44 : vector<1x16xi1> to vector<8x16xi1>
    %46 = arith.select %45, %43, %41 : vector<8x16xi1>, vector<8x16xf32>
    %cst_22 = arith.constant 0xFF800000 : f32
    %47 = vector.shape_cast %30 : vector<1x16xi1> to vector<1x16xi1>
    %48 = vector.broadcast %47 : vector<1x16xi1> to vector<8x16xi1>
    %49 = vector.broadcast %cst_22 : f32 to vector<8x16xf32>
    %50 = arith.select %48, %19, %49 : vector<8x16xi1>, vector<8x16xf32>
    %cst_23 = arith.constant dense<0xFF800000> : vector<8xf32>
    %51 = vector.multi_reduction <maximumf>, %50, %cst_23 [1] : vector<8x16xf32> to vector<8xf32>
    %52 = vector.shape_cast %51 : vector<8xf32> to vector<8x1xf32>
    %53 = vector.broadcast %52 : vector<8x1xf32> to vector<8x16xf32>
    %54 = arith.subf %19, %53 : vector<8x16xf32>
    %55 = vector.shape_cast %30 : vector<1x16xi1> to vector<1x16xi1>
    %56 = vector.broadcast %55 : vector<1x16xi1> to vector<8x16xi1>
    %57 = arith.select %56, %54, %46 : vector<8x16xi1>, vector<8x16xf32>
    %cst_24 = arith.constant 0.000000e+00 : f32
    %58 = vector.broadcast %cst_24 : f32 to vector<8x16xf32>
    %59 = arith.subf %58, %19 : vector<8x16xf32>
    %60 = vector.shape_cast %40 : vector<1x16xi1> to vector<1x16xi1>
    %61 = vector.broadcast %60 : vector<1x16xi1> to vector<8x16xi1>
    %62 = arith.select %61, %59, %57 : vector<8x16xi1>, vector<8x16xf32>
    %63 = math.exp %62 : vector<8x16xf32>
    %cst_25 = arith.constant 1.000000e+00 : f32
    %64 = vector.broadcast %cst_25 : f32 to vector<8x16xf32>
    %65 = arith.addf %64, %63 : vector<8x16xf32>
    %cst_26 = arith.constant 1.000000e+00 : f32
    %66 = vector.broadcast %cst_26 : f32 to vector<8x16xf32>
    %67 = arith.divf %66, %65 : vector<8x16xf32>
    %cst_27 = arith.constant 2.000000e+00 : f32
    %68 = vector.broadcast %cst_27 : f32 to vector<8x16xf32>
    %69 = arith.mulf %68, %67 : vector<8x16xf32>
    %cst_28 = arith.constant 1.000000e+00 : f32
    %70 = vector.broadcast %cst_28 : f32 to vector<8x16xf32>
    %71 = arith.subf %69, %70 : vector<8x16xf32>
    %72 = vector.shape_cast %25 : vector<1x16xi1> to vector<1x16xi1>
    %73 = vector.broadcast %72 : vector<1x16xi1> to vector<8x16xi1>
    %74 = arith.select %73, %71, %19 : vector<8x16xi1>, vector<8x16xf32>
    %cst_29 = arith.constant 0.000000e+00 : f32
    %75 = vector.shape_cast %30 : vector<1x16xi1> to vector<1x16xi1>
    %76 = vector.broadcast %75 : vector<1x16xi1> to vector<8x16xi1>
    %77 = vector.broadcast %cst_29 : f32 to vector<8x16xf32>
    %78 = arith.select %76, %63, %77 : vector<8x16xi1>, vector<8x16xf32>
    %cst_30 = arith.constant dense<0.000000e+00> : vector<8xf32>
    %79 = vector.multi_reduction <add>, %78, %cst_30 [1] : vector<8x16xf32> to vector<8xf32>
    %80 = vector.shape_cast %79 : vector<8xf32> to vector<8x1xf32>
    %cst_31 = arith.constant 1.000000e+00 : f32
    %81 = vector.broadcast %cst_31 : f32 to vector<8x1xf32>
    %82 = arith.divf %81, %80 : vector<8x1xf32>
    %83 = vector.broadcast %82 : vector<8x1xf32> to vector<8x16xf32>
    %84 = arith.mulf %63, %83 : vector<8x16xf32>
    %85 = vector.shape_cast %30 : vector<1x16xi1> to vector<1x16xi1>
    %86 = vector.broadcast %85 : vector<1x16xi1> to vector<8x16xi1>
    %87 = arith.select %86, %84, %74 : vector<8x16xi1>, vector<8x16xf32>
    %cst_32 = arith.constant 0.000000e+00 : f32
    %88 = vector.broadcast %cst_32 : f32 to vector<8x16xf32>
    %89 = arith.maximumf %19, %88 : vector<8x16xf32>
    %90 = vector.shape_cast %35 : vector<1x16xi1> to vector<1x16xi1>
    %91 = vector.broadcast %90 : vector<1x16xi1> to vector<8x16xi1>
    %92 = arith.select %91, %89, %87 : vector<8x16xi1>, vector<8x16xf32>
    %93 = vector.shape_cast %40 : vector<1x16xi1> to vector<1x16xi1>
    %94 = vector.broadcast %93 : vector<1x16xi1> to vector<8x16xi1>
    %95 = arith.select %94, %67, %92 : vector<8x16xi1>, vector<8x16xf32>
    %c0_33 = arith.constant 0 : index
    %c0_34 = arith.constant 0 : index
    %96 = vector.load %arg8[%c0_33, %c0_34] : memref<8x16xf32, #tpu.memory_space<vmem>>, vector<8x16xf32>
    tpu.vector_store %arg8[%c0_33, %c0_34], %95 {strides = array<i32>} : memref<8x16xf32, #tpu.memory_space<vmem>>, vector<8x16xf32>,
    return
  }
  func.func @transform_0(%arg0: i32) -> (i32, i32) {
    %c0_i32 = arith.constant 0 : i32
    %c0_i32_0 = arith.constant 0 : i32
    return %arg0, %c0_i32 : i32, i32
  }
  func.func @transform_1(%arg0: i32) -> (i32, i32) {
    %c0_i32 = arith.constant 0 : i32
    %c0_i32_0 = arith.constant 0 : i32
    %c0_i32_1 = arith.constant 0 : i32
    return %c0_i32, %c0_i32_0 : i32, i32
  }
  func.func @transform_2(%arg0: i32) -> (i32, i32) {
    %c0_i32 = arith.constant 0 : i32
    %c0_i32_0 = arith.constant 0 : i32
    %c0_i32_1 = arith.constant 0 : i32
    return %c0_i32, %c0_i32_0 : i32, i32
  }
  func.func @transform_3(%arg0: i32) -> (i32, i32) {
    %c0_i32 = arith.constant 0 : i32
    %c0_i32_0 = arith.constant 0 : i32
    %c0_i32_1 = arith.constant 0 : i32
    return %c0_i32, %c0_i32_0 : i32, i32
  }
  func.func @transform_4(%arg0: i32) -> (i32, i32) {
    %c0_i32 = arith.constant 0 : i32
    %c0_i32_0 = arith.constant 0 : i32
    %c0_i32_1 = arith.constant 0 : i32
    return %c0_i32, %c0_i32_0 : i32, i32
  }
  func.func @transform_5(%arg0: i32) -> (i32, i32) {
    %c0_i32 = arith.constant 0 : i32
    %c0_i32_0 = arith.constant 0 : i32
    %c0_i32_1 = arith.constant 0 : i32
    return %c0_i32, %c0_i32_0 : i32, i32
  }
  func.func @transform_6(%arg0: i32) -> (i32, i32) {
    %c0_i32 = arith.constant 0 : i32
    %c0_i32_0 = arith.constant 0 : i32
    %c0_i32_1 = arith.constant 0 : i32
    return %c0_i32, %c0_i32_0 : i32, i32
  }
  func.func @transform_7(%arg0: i32) -> (i32, i32) {
    %c0_i32 = arith.constant 0 : i32
    %c0_i32_0 = arith.constant 0 : i32
    return %arg0, %c0_i32 : i32, i32
  }
}

</mosaic_0001>

<bundles_post_ra>
// kernel: mlp_forward.1
= control target key start
LH: loop header
LB: loop body
LE: loop exit
PB: predicated region body
PF: predicated region fallthrough
CT: control target
= control target key end

     0   :  { %v530_v2 = vmov 0.0|0.0   ;;  %vm531_vm0 = vmmov 0   ;;  %v532_v4 = vmov 0.0   ;;  %vm37_vm1 = vcmask 130048   ;;  %s718_s0 = inlined_call_operand.vmem [shape: f32[8,16], index: 0, kind: input, shape index: {}]   ;;  %s719_s1 = inlined_call_operand.vmem [shape: f32[16,128], index: 1, kind: input, shape index: {}]   ;;  %s720_s2 = inlined_call_operand.vmem [shape: f32[1,128], index: 2, kind: input, shape index: {}]   ;;  %s721_s3 = inlined_call_operand.vmem [shape: f32[128,64], index: 3, kind: input, shape index: {}]   ;;  %s722_s4 = inlined_call_operand.vmem [shape: f32[1,64], index: 4, kind: input, shape index: {}]   ;;  %s723_s5 = inlined_call_operand.vmem [shape: f32[64,16], index: 5, kind: input, shape index: {}]   ;;  %s724_s6 = inlined_call_operand.vmem [shape: f32[1,16], index: 6, kind: input, shape index: {}]   ;;  %s725_s7 = inlined_call_operand.hbm [shape: f32[8,16], index: 7, kind: output, shape index: {}]  }
   0x1   :  { %v28_v0 = vld [vmem:[%s719_s1] sm:$0xff]  ;;  %v29_v1 = vld [vmem:[%s719_s1 + $0x8] sm:$0xff]  ;;  %457 = vmatprep.subr.bf16.mxu0 %v530_v2  ;;  %400 = vmatprep.mubr.msk.f32.mxu0 %vm531_vm0, %v532_v4  ;;  %v114_v7 = vld [vmem:[%s721_s3 + $0x10] sm:$0xff] }
   0x2   :  { %v458_v3 = vpack.c.bf16 %v29_v1, %v28_v0  ;;  %v112_v5 = vld [vmem:[%s721_s3] sm:$0xff]  ;;  %v113_v6 = vld [vmem:[%s721_s3 + $0x8] sm:$0xff]  ;;  %460 = vmatprep.subr.bf16.mxu1 %v530_v2  ;;  %v115_v9 = vld [vmem:[%s721_s3 + $0x18] sm:$0xff]  ;;  %435 = vmatprep.mubr.msk.f32.mxu1 %vm531_vm0, %v532_v4 }
   0x3   :  { %v461_v8 = vpack.c.bf16 %v113_v6, %v112_v5  ;;  %v27_v10 = vld [vmem:[%s718_s0] sm:$0xff]  ;;  %v464_v11 = vpack.c.bf16 %v115_v9, %v114_v7  ;;  %v117_v13 = vld [vmem:[%s721_s3 + $0x28] sm:$0xff] }
   0x4   :  { %459 = vmatpush3.bf16.msra.mxu0 %v458_v3  ;;  %v116_v12 = vld [vmem:[%s721_s3 + $0x20] sm:$0xff] }
   0x5   :  { %462 = vmatpush3.bf16.msra.mxu1 %v461_v8  ;;  %484 = vmatprep.subr.bf16.mxu0 %v530_v2 }
   0x6   :  { %463 = vmatprep.subr.bf16.mxu1 %v530_v2 }
   0x7   :  { %401 = vmatmul.mubr.msk.f32.vlgmr.msra.gmra.mrb[0].mxu0 %vm37_vm1, %v27_v10 }
   0x8   :  { %12 = vsyncpa [#allocation3], 0  ;;  %454 = vmatprep.mubr.msk.f32.mxu0 %vm531_vm0, %v532_v4  ;;  %v467_v14 = vpack.c.bf16 %v117_v13, %v116_v12  ;;  %v118_v15 = vld [vmem:[%s721_s3 + $0x30] sm:$0xff]  ;;  %v119_v16 = vld [vmem:[%s721_s3 + $0x38] sm:$0xff]  ;;  %vm221_vm2 = vcmask 523264   ;;  %v295_v52 = vlaneseq }
   0x9   :  { %465 = vmatpush3.bf16.msra.mxu1 %v464_v11  ;;  %v470_v17 = vpack.c.bf16 %v119_v16, %v118_v15  ;;  %v120_v18 = vld [vmem:[%s721_s3 + $0x40] sm:$0xff]  ;;  %v121_v19 = vld [vmem:[%s721_s3 + $0x48] sm:$0xff]  ;;  %v122_v21 = vld [vmem:[%s721_s3 + $0x50] sm:$0xff] }
   0xa   :  { %466 = vmatprep.subr.bf16.mxu1 %v530_v2  ;;  %v473_v20 = vpack.c.bf16 %v121_v19, %v120_v18  ;;  %v123_v22 = vld [vmem:[%s721_s3 + $0x58] sm:$0xff]  ;;  %v124_v24 = vld [vmem:[%s721_s3 + $0x60] sm:$0xff]  ;;  %v125_v25 = vld [vmem:[%s721_s3 + $0x68] sm:$0xff]  ;;  %v296_v53 = vand.u32 127, %v295_v52 }
   0xb   :  { %v476_v23 = vpack.c.bf16 %v123_v22, %v122_v21  ;;  %v479_v26 = vpack.c.bf16 %v125_v25, %v124_v24  ;;  %v126_v27 = vld [vmem:[%s721_s3 + $0x70] sm:$0xff]  ;;  %v127_v28 = vld [vmem:[%s721_s3 + $0x78] sm:$0xff]  ;;  %v206_v30 = vld [vmem:[%s723_s5] sm:$0xff] }
   0xc   :  { %v482_v29 = vpack.c.bf16 %v127_v28, %v126_v27  ;;  %v207_v31 = vld [vmem:[%s723_s5 + $0x8] sm:$0xff]  ;;  %v208_v32 = vld [vmem:[%s723_s5 + $0x10] sm:$0xff]  ;;  %v209_v34 = vld [vmem:[%s723_s5 + $0x18] sm:$0xff]  ;;  %vm300_vm3 = vcmp.ge.s32.totalorder %v296_v53, 4  ;;  %vm301_vm4 = vcmp.lt.s32.totalorder %v296_v53, 7  ;;  %vm306_vm6 = vcmp.ge.s32.totalorder %v296_v53, 12 }
   0xd   :  { %468 = vmatpush3.bf16.msra.mxu1 %v467_v14  ;;  %v485_v33 = vpack.c.bf16 %v207_v31, %v206_v30  ;;  %v488_v35 = vpack.c.bf16 %v209_v34, %v208_v32  ;;  %v210_v36 = vld [vmem:[%s723_s5 + $0x20] sm:$0xff]  ;;  %v211_v37 = vld [vmem:[%s723_s5 + $0x28] sm:$0xff]  ;;  %v212_v44 = vld [vmem:[%s723_s5 + $0x30] sm:$0xff]  ;;  %vm307_vm7 = vcmp.lt.s32.totalorder %v296_v53, 14  ;;  %vm298_vm8 = vcmp.lt.s32.totalorder %v296_v53, 4 }
   0xe   :  { %469 = vmatprep.subr.bf16.mxu1 %v530_v2  ;;  %v491_v38 = vpack.c.bf16 %v211_v37, %v210_v36  ;;  %v361_v39 = vld [vmem:[%s720_s2] ss:$0 sm:$0xff]  ;;  %v213_v45 = vld [vmem:[%s723_s5 + $0x38] sm:$0xff]  ;;  %vm681_vm5 = vmand %vm300_vm3, %vm301_vm4  ;;  %vm303_vm10 = vcmp.ge.s32.totalorder %v296_v53, 7  ;;  %vm304_vm11 = vcmp.lt.s32.totalorder %v296_v53, 12 }
   0xf   :  { %486 = vmatpush3.bf16.msra.mxu0 %v485_v33  ;;  %v494_v46 = vpack.c.bf16 %v213_v45, %v212_v44  ;;  %v363_v47 = vld [vmem:[%s722_s4] ss:$0 sm:$0xff]  ;;  %vm688_vm9 = vmand %vm306_vm6, %vm307_vm7  ;;  %s533_s4 = smov [#allocation2]  }
  0x10   :  { %487 = vmatprep.subr.bf16.mxu0 %v530_v2  ;;  %v364_v54 = vld [vmem:[%s724_s6] ss:$0 sm:$0xff]  ;;  %vm305_vm12 = vmand %vm303_vm10, %vm304_vm11  ;;  %s353_s5 = sshll.u32 %s533_s4, 4  ;;  %s354_s5 = int_to_ptr.vmem [resolvable:$true] %s353_s5 }
  0x11   :  { %471 = vmatpush3.bf16.msra.mxu1 %v470_v17  ;;  %s506_s6 = scalar_lea.vmem %s354_s5, 128  ;;  %p511_p1 = scmp.lt.s32.totalorder %s354_s5, %s354_s5 }
  0x12   :  { %472 = vmatprep.subr.bf16.mxu1 %v530_v2  ;;  %p507_p0 = scmp.ne.s32.totalorder %s354_s5, %s506_s6  ;;  %p512_p2 = scmp.lt.s32.totalorder %s506_s6, %s506_s6 }
  0x13   :  { %489 = vmatpush3.bf16.msra.mxu0 %v488_v35 }
  0x14   :  { %490 = vmatprep.subr.bf16.mxu0 %v530_v2  ;;  %p513_p3 = por %p512_p2, %p511_p1 }
  0x15   :  { %474 = vmatpush3.bf16.msra.mxu1 %v473_v20 }
  0x16   :  { %475 = vmatprep.subr.bf16.mxu1 %v530_v2  ;;  %p514_p4 = pnand %p513_p3, %p507_p0 }
  0x17   :  { %492 = vmatpush3.bf16.msra.mxu0 %v491_v38 }
  0x18   :  { %493 = vmatprep.subr.bf16.mxu0 %v530_v2 }
  0x19   :  { %477 = vmatpush3.bf16.msra.mxu1 %v476_v23 }
  0x1a   :  { %478 = vmatprep.subr.bf16.mxu1 %v530_v2 }
  0x1b   :  { %495 = vmatpush3.bf16.msra.mxu0 %v494_v46 }
  0x1d   :  { %480 = vmatpush3.bf16.msra.mxu1 %v479_v26 }
  0x1e   :  { %481 = vmatprep.subr.bf16.mxu1 %v530_v2 }
  0x21   :  { %483 = vmatpush3.bf16.msra.mxu1 %v482_v29 }
  0xda   :  { %v107_v40 = vpop.f32.mrb[0].mxu0 }
  0xdb   :  { %v108_v41 = vadd.f32 %v361_v39, %v107_v40  ;;  %v402_v42 = vpop.f32.mrb[1].mxu0 }
  0xdd   :  { %v111_v43 = vmax.f32 %v108_v41, 0.0 }
  0xdf   :  { %436 = vmatmul.mubr.f32.vlgmr.msra.gmra.mrb[0].mxu1 %v111_v43 }
 0x1b2   :  { %v201_v48 = vpop.f32.mrb[0].mxu1 }
 0x1b3   :  { %v202_v49 = vadd.f32 %v363_v47, %v201_v48  ;;  %v437_v50 = vpop.f32.mrb[1].mxu1 }
 0x1b5   :  { %v205_v51 = vmax.f32 %v202_v49, 0.0 }
 0x1b7   :  { %455 = vmatmul.mubr.msk.f32.vlgmr.msra.gmra.mrb[2].mxu0 %vm221_vm2, %v205_v51 }
 0x28a   :  { %v291_v55 = vpop.f32.mrb[2].mxu0 }
 0x28b   :  { %v292_v57 = vadd.f32 %v364_v54, %v291_v55  ;;  %v456_v58 = vpop.f32.mrb[3].mxu0 }
 0x28d   :  { %v315_v59 = vsel %vm681_vm5, %v292_v57, -inf  ;;  %v309_v61 = vmul.f32 -2.0, %v292_v57  ;;  %v321_v1 = vsub.f32 0.0, %v292_v57  ;;  %v341_v17 = vmax.f32 %v292_v57, 0.0 }
 0x28e   :  { %v316_v60 = vsel %vm37_vm1, %v315_v59, -inf }
 0x28f   :  { %317 = vmax.xlane.f32.xlu0 %v316_v60  ;;  %v312_v2 = vsel %vm298_vm8, %v309_v61, 0.0 }
 0x31c   :  { %v318_v62 = vpop.xlane.xlu0 %317 }
 0x31d   :  { %v319_v0 = vsub.f32 %v292_v57, %v318_v62 }
 0x31f   :  { %v320_v3 = vsel %vm681_vm5, %v319_v0, %v312_v2 }
 0x320   :  { %v324_v4 = vsel %vm688_vm9, %v321_v1, %v320_v3 }
 0x321   :  { %v325_v5 = vmul.f32 1.442695, %v324_v4 }
 0x323   :  { %500 = vpow2.f32 %v325_v5 }
 0x32d   :  { %v501_v6 = vpop.eup %500 }
 0x32e   :  { %v333_v7 = vsel %vm681_vm5, %v501_v6, 0.0  ;;  %v327_v9 = vadd.f32 1.0, %v501_v6 }
 0x32f   :  { %v334_v8 = vsel %vm37_vm1, %v333_v7, 0.0 }
 0x330   :  { %335 = vadd.xlane.f32.xlu0 %v334_v8  ;;  %502 = vrcp.f32 %v327_v9 }
 0x33a   :  { %v503_v11 = vpop.eup %502 }
 0x33b   :  { %v330_v12 = vmul.f32 2.0, %v503_v11 }
 0x33d   :  { %v366_v13 = vadd.f32 -1.0, %v330_v12 }
 0x33f   :  { %v332_v16 = vsel %vm298_vm8, %v366_v13, %v292_v57 }
 0x3bd   :  { %v336_v10 = vpop.xlane.xlu0 %335 }
 0x3be   :  { %504 = vrcp.f32 %v336_v10 }
 0x3c8   :  { %v505_v14 = vpop.eup %504 }
 0x3c9   :  { %v339_v15 = vmul.f32 %v505_v14, %v501_v6 }
 0x3cb   :  { %v340_v18 = vsel %vm681_vm5, %v339_v15, %v332_v16 }
 0x3cc   :  { %v344_v19 = vsel %vm305_vm12, %v341_v17, %v340_v18 }
 0x3cd   :  { %v345_v20 = vsel %vm688_vm9, %v503_v11, %v344_v19 }
 0x3ce   :  { %346 = vst.msk [vmem:[#allocation2] sm:$0xff] %vm37_vm1, %v345_v20 }
 0x3cf   :  { %517 = shalt.err (!%p514_p4)
}
 0x3d0   :  { %s518_s1 = scalar_lea.hbm %s725_s7, 128 }
 0x3d1   :  { %p519_p5 = scmp.ne.s32.totalorder %s725_s7, %s518_s1  ;;  %p522_p6 = scmp.lt.u32.totalorder %s518_s1, %s725_s7 }
 0x3d3   :  { %p524_p7 = pnand %p522_p6, %p519_p5 }
 0x3d5   :  { %527 = shalt.err (!%p524_p7)
}
 0x3d6   :  { %356 = dma.vmem_to_hbm [thread:$0]  %s354_s5, 128, %s725_s7, [#allocation3]  }
 0x3d7   :  { %528 = dma.done.wait [#allocation3], 128  }
 0x3d8   :  { %529 = vsyncadd [#allocation3], 4294967168 }
 0x3d9   :  { %360 = vsyncpa [#allocation3], 1 }

</bundles_post_ra>
